<compile_context>
chip_gen: v7x
topology: tpu7x:2x2x1
jax: 0.10.0
libtpu: 0.0.40
codegen_flags: <defaults>
</compile_context>

<pallas_src>
import functools

import numpy as np
import jax
import jax.numpy as jnp
from jax.experimental import pallas as pl
from jax.experimental.pallas import tpu as pltpu


def _round_up(x, m):
    return (x + m - 1) // m * m


@functools.lru_cache(maxsize=None)
def _vmem_limit_bytes():
    """Per-generation VMEM budget (v5e/v6e: 128 MiB, v7x: 64 MiB per core)."""
    try:
        info = pltpu.get_tpu_info()
        cap = getattr(info, "vmem_capacity_bytes", None) or (64 * 1024 * 1024)
    except Exception:  # pragma: no cover - conservative fallback (v7x size)
        cap = 64 * 1024 * 1024
    # Leave generous headroom for compiler scratch; cap at ~96 MiB on big-VMEM parts.
    return int(max(32 * 1024 * 1024, min(int(cap * 0.7), 96 * 1024 * 1024)))


def _matmul_kernel(a_ref, b_ref, o_ref):
    # The contraction dimension is fully resident (single k step), so the MXU
    # result is written straight to the output tile -- no accumulator scratch,
    # no init/finalize pl.when, no VMEM->VMEM copy.
    o_ref[...] = jnp.dot(
        a_ref[...], b_ref[...], preferred_element_type=jnp.float32
    ).astype(o_ref.dtype)


def _choose_tn(vout_p, vin, n, map_bytes, in_bytes, out_bytes, vmem_limit):
    """Largest 128-multiple lane tile of the streamed N axis that fits VMEM
    (double-buffered x/out tiles + the resident map)."""
    budget = int(vmem_limit * 0.8)
    tn = 2048
    while tn > 128:
        need = (2 * map_bytes
                + 2 * vin * tn * in_bytes
                + 2 * vout_p * tn * out_bytes)
        if need <= budget:
            break
        tn //= 2
    tn = min(tn, _round_up(n, 128))
    n_p = _round_up(n, tn)
    # Keep >= 2 lane tiles when there is enough work so the "parallel" axis can
    # be sharded across both TensorCores on v7x (harmless on 1-TC chips).
    if n_p // tn < 2 and n_p >= 256:
        tn = _round_up(n_p // 2, 128)
        n_p = _round_up(n, tn)
    return tn, n_p


@functools.partial(jax.jit, static_argnames=("vout", "out_dtype"))
def _sample_folded(map_p, x, *, vout, out_dtype):
    """N = B*C >= 128: fold batch into a lane-dense N axis, stream N tiles."""
    B, Vin, C = x.shape
    N = B * C
    Vout_p, Vin_m = map_p.shape
    assert Vin_m == Vin
    cdt = map_p.dtype
    vmem_limit = _vmem_limit_bytes()
    out_bytes = np.dtype(out_dtype).itemsize
    tn, N_p = _choose_tn(Vout_p, Vin, N, map_p.size * map_p.dtype.itemsize,
                         cdt.itemsize, out_bytes, vmem_limit)

    # [B, Vin, C] -> [Vin, B*C] (cast + pad fuse into this one copy under jit).
    x2 = jnp.swapaxes(x, 0, 1).reshape(Vin, N).astype(cdt)
    x2_p = jnp.zeros((Vin, N_p), cdt).at[:, :N].set(x2)

    out = pl.pallas_call(
        _matmul_kernel,
        out_shape=jax.ShapeDtypeStruct((Vout_p, N_p), out_dtype),
        grid=(N_p // tn,),
        in_specs=[
            # Resident map: constant block index -> DMA'd to VMEM exactly once.
            pl.BlockSpec((Vout_p, Vin), lambda j: (0, 0)),
            pl.BlockSpec((Vin, tn), lambda j: (0, j)),
        ],
        out_specs=pl.BlockSpec((Vout_p, tn), lambda j: (0, j)),
        compiler_params=pltpu.CompilerParams(
            dimension_semantics=("parallel",),
            vmem_limit_bytes=vmem_limit,
        ),
    )(map_p, x2_p)

    y = out[:vout, :N].reshape(vout, B, C)
    return jnp.transpose(y, (1, 0, 2))


@functools.partial(jax.jit, static_argnames=("vout", "out_dtype"))
def _sample_batched(map_p, x, *, vout, out_dtype):
    """C is a multiple of 128: keep [B, V, C] layout (no fold / transpose
    passes); grid = (batch, C tiles) with the map resident."""
    B, Vin, C = x.shape
    Vout_p, Vin_m = map_p.shape
    assert Vin_m == Vin
    cdt = map_p.dtype
    vmem_limit = _vmem_limit_bytes()
    out_bytes = np.dtype(out_dtype).itemsize
    budget = int(vmem_limit * 0.8)
    map_bytes = map_p.size * map_p.dtype.itemsize

    tc = 128
    for cand in (2048, 1024, 512, 256, 128):
        if C % cand != 0:
            continue
        need = 2 * map_bytes + 2 * Vin * cand * cdt.itemsize + 2 * Vout_p * cand * out_bytes
        if need <= budget:
            tc = cand
            break

    xc = x.astype(cdt)
    out = pl.pallas_call(
        _matmul_kernel,
        out_shape=jax.ShapeDtypeStruct((B, Vout_p, C), out_dtype),
        grid=(B, C // tc),
        in_specs=[
            pl.BlockSpec((Vout_p, Vin), lambda b, j: (0, 0)),      # resident map
            pl.BlockSpec((None, Vin, tc), lambda b, j: (b, 0, j)),  # batch squeezed
        ],
        out_specs=pl.BlockSpec((None, Vout_p, tc), lambda b, j: (b, 0, j)),
        compiler_params=pltpu.CompilerParams(
            dimension_semantics=("parallel", "parallel"),
            vmem_limit_bytes=vmem_limit,
        ),
    )(map_p, xc)
    return out[:, :vout, :]


@functools.partial(jax.jit, static_argnames=("vout", "out_dtype"))
def _sample_small_n(map_t_p, x, *, vout, out_dtype):
    """N = B*C < 128 (e.g. vertex coords, C=3): compute (x^T @ map^T)^T so the
    large vertex dimension is on the 128-lane axis of the output (lane-dense
    stores). Everything fits VMEM -> single kernel invocation."""
    B, Vin, C = x.shape
    N = B * C
    Vin_m, Vout_p = map_t_p.shape
    assert Vin_m == Vin
    cdt = map_t_p.dtype
    N_p = _round_up(N, 16)  # bf16 sublane packing

    xt = jnp.swapaxes(x, 1, 2).reshape(N, Vin).astype(cdt)     # [N, Vin]
    xt_p = jnp.zeros((N_p, Vin), cdt).at[:N, :].set(xt)

    out = pl.pallas_call(
        _matmul_kernel,
        out_shape=jax.ShapeDtypeStruct((N_p, Vout_p), out_dtype),
        grid=(1,),
        in_specs=[
            pl.BlockSpec((N_p, Vin), lambda i: (0, 0)),
            pl.BlockSpec((Vin, Vout_p), lambda i: (0, 0)),
        ],
        out_specs=pl.BlockSpec((N_p, Vout_p), lambda i: (0, 0)),
        compiler_params=pltpu.CompilerParams(
            dimension_semantics=("arbitrary",),
            vmem_limit_bytes=_vmem_limit_bytes(),
        ),
    )(xt_p, map_t_p)

    y = out[:N, :vout].reshape(B, C, vout)
    return jnp.transpose(y, (0, 2, 1))


class MeshSamplerPallas:
    """JAX/Pallas port of pymafx Mesh_Sampler (type='smpl'/'mano' path).

    Dmap/Umap are batch-shared constants, so their bf16 casts / paddings (both
    row-major and transposed orientations) are computed once here, not per call.
    """

    def __init__(self, n_verts_full, n_verts_down, key,
                 compute_dtype=jnp.bfloat16, out_dtype=jnp.float32):
        self.V = int(n_verts_full)
        self.Vd = int(n_verts_down)
        self.compute_dtype = jnp.dtype(compute_dtype)
        self.out_dtype = out_dtype

        kd, ku = jax.random.split(key)
        # Synthetic deterministic stand-ins for the npz-loaded Dmap/Umap buffers.
        self.Dmap = jax.random.normal(kd, (self.Vd, self.V), dtype=jnp.float32)
        self.Umap = jax.random.normal(ku, (self.V, self.Vd), dtype=jnp.float32)

        self._Dmap_row = self._pad_row(self.Dmap)   # [round16(Vd), V]
        self._Umap_row = self._pad_row(self.Umap)   # [round16(V), Vd]
        self._Dmap_t = self._pad_t(self.Dmap)       # [V, round128(Vd)]
        self._Umap_t = self._pad_t(self.Umap)       # [Vd, round128(V)]

    def _pad_row(self, m):
        vout, vin = m.shape
        vout_p = _round_up(vout, 16)    # bf16 packs (16, 128) per vreg
        out = jnp.zeros((vout_p, vin), self.compute_dtype)
        return out.at[:vout, :].set(m.astype(self.compute_dtype))

    def _pad_t(self, m):
        vout, vin = m.shape
        vout_p = _round_up(vout, 128)   # lane-dense output in the small-N path
        out = jnp.zeros((vin, vout_p), self.compute_dtype)
        return out.at[:, :vout].set(m.T.astype(self.compute_dtype))

    def _apply(self, map_row, map_t, vout, x):
        B, _, C = x.shape
        n = B * C
        if n < 128:
            return _sample_small_n(map_t, x, vout=vout, out_dtype=self.out_dtype)
        if C >= 128 and C % 128 == 0:
            return _sample_batched(map_row, x, vout=vout, out_dtype=self.out_dtype)
        return _sample_folded(map_row, x, vout=vout, out_dtype=self.out_dtype)

    def downsample(self, x):
        return self._apply(self._Dmap_row, self._Dmap_t, self.Vd, x)

    def upsample(self, x):
        return self._apply(self._Umap_row, self._Umap_t, self.V, x)

    def __call__(self, x, mode="downsample"):
        if mode == "downsample":
            return self.downsample(x)
        if mode == "upsample":
            return self.upsample(x)
        raise ValueError(mode)

    # TODO(synk): 'flame' branch (index gather x[:, sampling_idx]) not ported;
    # it is a scalar-prefetch row gather (pl.Element index_map), not a matmul.


def _ref_matmul(sample_map, x):
    # Plain-JAX reference reproducing the kernel's bf16-input / f32-accumulate math.
    m = sample_map.astype(jnp.bfloat16).astype(jnp.float32)
    xx = x.astype(jnp.bfloat16).astype(jnp.float32)
    return jnp.matmul(m[None], xx)


if __name__ == "__main__":
    key = jax.random.PRNGKey(0)
    k_param, k1, k2, k3 = jax.random.split(key, 4)

    B = 2     # batch
    V = 64    # full mesh vertex count (small synthetic)
    Vd = 16   # downsampled vertex count

    sampler = MeshSamplerPallas(n_verts_full=V, n_verts_down=Vd, key=k_param)

    # --- Path B: small N (B*C < 128), lane-dense transposed layout -----------
    C1 = 32
    x1 = jax.random.normal(k1, (B, V, C1), dtype=jnp.float32)
    y1_down = sampler(x1, mode="downsample")        # [B, Vd, C1]
    y1_up = sampler(y1_down, mode="upsample")       # [B, V,  C1]
    jax.block_until_ready(y1_down)
    jax.block_until_ready(y1_up)
    assert y1_down.shape == (B, Vd, C1)
    assert y1_up.shape == (B, V, C1)
    assert jnp.allclose(y1_down, _ref_matmul(sampler.Dmap, x1), atol=1e-2, rtol=1e-2)
    assert jnp.allclose(y1_up, _ref_matmul(sampler.Umap, y1_down), atol=1e-2, rtol=1e-2)
    # Sanity vs. full-f32 torch semantics (looser: bf16 inputs).
    assert jnp.allclose(y1_down, jnp.matmul(sampler.Dmap[None], x1),
                        atol=1.5e-1, rtol=5e-2)

    # --- Path A: folded batch (B*C >= 128, C not a 128 multiple) -------------
    C2 = 96
    x2 = jax.random.normal(k2, (B, V, C2), dtype=jnp.float32)
    y2_down = sampler(x2, mode="downsample")        # [B, Vd, C2]
    y2_up = sampler(y2_down, mode="upsample")       # [B, V,  C2]
    jax.block_until_ready(y2_down)
    jax.block_until_ready(y2_up)
    assert y2_down.shape == (B, Vd, C2)
    assert y2_up.shape == (B, V, C2)
    assert jnp.allclose(y2_down, _ref_matmul(sampler.Dmap, x2), atol=1e-2, rtol=1e-2)
    assert jnp.allclose(y2_up, _ref_matmul(sampler.Umap, y2_down), atol=1e-2, rtol=1e-2)

    # --- Path C: C already 128-aligned (no fold / no extra layout passes) ----
    C3 = 128
    x3 = jax.random.normal(k3, (B, V, C3), dtype=jnp.float32)
    y3_down = sampler(x3, mode="downsample")        # [B, Vd, C3]
    jax.block_until_ready(y3_down)
    assert y3_down.shape == (B, Vd, C3)
    assert jnp.allclose(y3_down, _ref_matmul(sampler.Dmap, x3), atol=1e-2, rtol=1e-2)

    print("KERNEL_OK")
</pallas_src>

<mosaic_0001>
module attributes {stable_mosaic.version = 11 : i64} {
  func.func @_matmul_kernel(%arg0: i32, %arg1: memref<64x64xbf16, #tpu.memory_space<vmem>>, %arg2: memref<64x128xbf16, #tpu.memory_space<vmem>>, %arg3: memref<64x128xf32, #tpu.memory_space<vmem>>) attributes {dimension_semantics = [#tpu.dimension_semantics<arbitrary>], iteration_bounds = array<i64: 1>, scalar_prefetch = 0 : i64, scratch_operands = 0 : i64, tpu.core_type = #tpu.core_type<tc>, window_params = [{pipeline_mode = #tpu.pipeline_mode<synchronous>, transform_indices = @transform_0, window_bounds = array<i64: 64, 64>}, {pipeline_mode = #tpu.pipeline_mode<synchronous>, transform_indices = @transform_1, window_bounds = array<i64: 64, 128>}, {pipeline_mode = #tpu.pipeline_mode<synchronous>, transform_indices = @transform_2, window_bounds = array<i64: 64, 128>}]} {
    %c0 = arith.constant 0 : index
    %c0_0 = arith.constant 0 : index
    %0 = vector.load %arg1[%c0, %c0_0] : memref<64x64xbf16, #tpu.memory_space<vmem>>, vector<64x64xbf16>
    %c0_1 = arith.constant 0 : index
    %c0_2 = arith.constant 0 : index
    %1 = vector.load %arg2[%c0_1, %c0_2] : memref<64x128xbf16, #tpu.memory_space<vmem>>, vector<64x128xbf16>
    %cst = arith.constant dense<0.000000e+00> : vector<64x128xf32>
    %2 = tpu.matmul %0, %1, %cst {dimension_numbers = #tpu.dot_dimension_numbers<[1], [0], [0], [1], [0, 0, 1, 1], [], []>} : vector<64x64xbf16>, vector<64x128xbf16>, vector<64x128xf32> -> vector<64x128xf32>
    %c0_3 = arith.constant 0 : index
    %c0_4 = arith.constant 0 : index
    %3 = vector.load %arg3[%c0_3, %c0_4] : memref<64x128xf32, #tpu.memory_space<vmem>>, vector<64x128xf32>
    tpu.vector_store %arg3[%c0_3, %c0_4], %2 {strides = array<i32>} : memref<64x128xf32, #tpu.memory_space<vmem>>, vector<64x128xf32>,
    return
  }
  func.func @transform_0(%arg0: i32) -> (i32, i32) {
    %c0_i32 = arith.constant 0 : i32
    %c0_i32_0 = arith.constant 0 : i32
    %c0_i32_1 = arith.constant 0 : i32
    return %c0_i32, %c0_i32_0 : i32, i32
  }
  func.func @transform_1(%arg0: i32) -> (i32, i32) {
    %c0_i32 = arith.constant 0 : i32
    %c0_i32_0 = arith.constant 0 : i32
    %c0_i32_1 = arith.constant 0 : i32
    return %c0_i32, %c0_i32_0 : i32, i32
  }
  func.func @transform_2(%arg0: i32) -> (i32, i32) {
    %c0_i32 = arith.constant 0 : i32
    %c0_i32_0 = arith.constant 0 : i32
    %c0_i32_1 = arith.constant 0 : i32
    return %c0_i32, %c0_i32_0 : i32, i32
  }
}

</mosaic_0001>

<bundles_post_ra>
// kernel: _sample_small_n.1
= control target key start
LH: loop header
LB: loop body
LE: loop exit
PB: predicated region body
PF: predicated region fallthrough
CT: control target
= control target key end

     0   :  { %vm72_vm0 = vcmask 523264   ;;  %s281_s1 = inlined_call_operand.vmem [shape: bf16[64,128], index: 1, kind: input, shape index: {}]   ;;  %s282_s0 = inlined_call_operand.vmem [shape: bf16[64,64], index: 0, kind: input, shape index: {}]   ;;  %s283_s2 = inlined_call_operand.vmem [shape: f32[64,128], index: 2, kind: output, shape index: {}]  }
   0x1   :  { %v206_v0 = vld [vmem:[%s281_s1] sm:$0xff]   ;;  %v207_v1 = vld [vmem:[%s281_s1 + $0x8] sm:$0xff]   ;;  %v208_v2 = vld [vmem:[%s281_s1 + $0x10] sm:$0xff]  }
   0x2   :  { %182 = vmatprep.subr.bf16.mxu0 %v206_v0  ;;  %198 = vmatprep.subr.bf16.mxu1 %v206_v0  ;;  %v210_v3 = vld [vmem:[%s282_s0] sm:$0xff]   ;;  %v211_v4 = vld [vmem:[%s282_s0 + $0x10] sm:$0xff]   ;;  %v209_v5 = vld [vmem:[%s281_s1 + $0x18] sm:$0xff]  }
   0x3   :  { %183 = vmatpush3.bf16.msra.mxu0 %v206_v0  ;;  %202 = vmatpush3.bf16.msra.mxu1 %v206_v0  ;;  %v212_v6 = vld [vmem:[%s282_s0 + $0x8] sm:$0xff]   ;;  %v213_v7 = vld [vmem:[%s282_s0 + $0x18] sm:$0xff]  }
   0x4   :  { %184 = vmatprep.subr.bf16.mxu0 %v207_v1  ;;  %199 = vmatprep.subr.bf16.mxu1 %v207_v1 }
   0x5   :  { %190 = vmatprep.mubr.msk.bf16.mxu0 %vm72_vm0, %v210_v3  ;;  %194 = vmatprep.mubr.msk.bf16.mxu1 %vm72_vm0, %v211_v4 }
   0x7   :  { %185 = vmatpush3.bf16.msra.mxu0 %v207_v1  ;;  %203 = vmatpush3.bf16.msra.mxu1 %v207_v1 }
   0x8   :  { %186 = vmatprep.subr.bf16.mxu0 %v208_v2  ;;  %200 = vmatprep.subr.bf16.mxu1 %v208_v2 }
   0xb   :  { %187 = vmatpush3.bf16.msra.mxu0 %v208_v2  ;;  %204 = vmatpush3.bf16.msra.mxu1 %v208_v2 }
   0xc   :  { %188 = vmatprep.subr.bf16.mxu0 %v209_v5  ;;  %201 = vmatprep.subr.bf16.mxu1 %v209_v5 }
   0xf   :  { %189 = vmatpush3.bf16.msra.mxu0 %v209_v5  ;;  %205 = vmatpush3.bf16.msra.mxu1 %v209_v5 }
  0x12   :  { %191 = vmatmul.mubr.msk.bf16.vlgmr.msra.gmra.mrb[0].mxu0 %vm72_vm0, %v212_v6  ;;  %195 = vmatmul.mubr.msk.bf16.vlgmr.msra.gmra.mrb[0].mxu1 %vm72_vm0, %v213_v7 }
  0xe5   :  { %v192_v8 = vpop.f32.mrb[0].mxu0  ;;  %v196_v9 = vpop.f32.mrb[0].mxu1 }
  0xe6   :  { %152 = vst [vmem:[%s283_s2 + $0x10] sm:$0xff] %v192_v8  ;;  %156 = vst [vmem:[%s283_s2 + $0x30] sm:$0xff] %v196_v9  ;;  %v119_v10 = vpop.f32.mrb[1].mxu0  ;;  %v135_v11 = vpop.f32.mrb[1].mxu1 }
  0xe7   :  { %150 = vst [vmem:[%s283_s2] sm:$0xff] %v119_v10  ;;  %154 = vst [vmem:[%s283_s2 + $0x20] sm:$0xff] %v135_v11  ;;  %v193_v12 = vpop.f32.mrb[2].mxu0  ;;  %v197_v13 = vpop.f32.mrb[2].mxu1 }
  0xe8   :  { %153 = vst [vmem:[%s283_s2 + $0x18] sm:$0xff] %v193_v12  ;;  %157 = vst [vmem:[%s283_s2 + $0x38] sm:$0xff] %v197_v13  ;;  %v122_v14 = vpop.f32.mrb[3].mxu0  ;;  %v138_v15 = vpop.f32.mrb[3].mxu1 }
  0xe9   :  { %151 = vst [vmem:[%s283_s2 + $0x8] sm:$0xff] %v122_v14  ;;  %155 = vst [vmem:[%s283_s2 + $0x28] sm:$0xff] %v138_v15 }

</bundles_post_ra>
